<compile_context>
chip_gen: v7x
topology: tpu7x:2x2x1
jax: 0.10.0
libtpu: 0.0.40
codegen_flags: <defaults>
</compile_context>

<pallas_src>
import math

import jax
import jax.numpy as jnp
from jax.experimental import pallas as pl
from jax.experimental.pallas import tpu as pltpu


def _belief_kernel(ctx_in_ref, w_ctx_ref, prev_ref, w_lat_ref, v_ref,
                   latent_ref, aux_ref):
    """One row-tile of the fused GPL-style propagate.

    ctx_in_ref : [TB, Kpad]  bf16  packed [obs | act | others | exist | 1 | 0-pad]
    w_ctx_ref  : [Kpad, E]   bf16  fused context weight (bias packed as a row)
    prev_ref   : [TB*P, E]   bf16  previous particle latents (flattened rows)
    w_lat_ref  : [E, E]      bf16  latent transition weight
    v_ref      : [1, E]      f32   log-weight readout vector
    latent_ref : [TB, P, E]  f32   new particle latents
    aux_ref    : [TB, L]     f32   lanes [0,P): log w_t ; lanes [P,L): logsumexp
    """
    f32 = jnp.float32
    TB, P, E = latent_ref.shape

    # (1) Fused context encoding: one bf16 MXU pass, f32 accumulation.
    ctx = jnp.dot(ctx_in_ref[...], w_ctx_ref[...],
                  preferred_element_type=f32)                         # [TB, E]

    # (2) Per-particle latent update as a single 2D bf16 MXU matmul.
    z2 = jnp.dot(prev_ref[...], w_lat_ref[...],
                 preferred_element_type=f32)                          # [TB*P, E]

    # Elementwise / transcendental math stays in f32 (no bf16 VPU/EUP on v5e).
    h = jnp.tanh(z2.reshape(TB, P, E) + ctx[:, None, :])              # [TB, P, E]
    latent_ref[...] = h.astype(latent_ref.dtype)

    # (3) log(w_t) per particle — lane reduce against v; result lands directly
    #     in the [TB, P] layout needed for the logsumexp below.
    v = v_ref[...].astype(f32)                                        # [1, E]
    log_w = jnp.sum(h * v[None, :, :], axis=-1)                       # [TB, P]

    # (4) total_encoding_loss = logsumexp_p(log w_t)  (numerically stable).
    # TODO(synk): confirm whether GPLBeliefModule wants log-mean-exp
    # (i.e. an extra -log(P) constant); logsumexp is kept here per the spec.
    m = jnp.max(log_w, axis=-1, keepdims=True)                        # [TB, 1]
    total = m + jnp.log(jnp.sum(jnp.exp(log_w - m), axis=-1, keepdims=True))

    # (5) Lane-dense packed aux output: [log w_t | total broadcast].
    lanes = aux_ref.shape[-1]
    aux_ref[...] = jnp.concatenate(
        [log_w, jnp.broadcast_to(total, (TB, lanes - P))], axis=-1)


def init_params(key, *, num_agents, obs_dim, action_space, encoding_dim):
    """Builds the packed (fused, 128-padded) weight matrices directly."""
    ks = jax.random.split(key, 7)

    def dense(k, fan_in, fan_out):
        scale = 1.0 / math.sqrt(float(fan_in))
        return scale * jax.random.normal(k, (fan_in, fan_out), jnp.float32)

    A, Dobs, Act, E = num_agents, obs_dim, action_space, encoding_dim
    w_obs = dense(ks[0], A * Dobs, E)
    w_act = dense(ks[1], Act, E)
    w_oth = dense(ks[2], (A - 1) * Act, E)
    w_ex = dense(ks[3], A, E)
    w_lat = dense(ks[4], E, E)
    bias = 0.1 * jax.random.normal(ks[5], (1, E), jnp.float32)
    v = dense(ks[6], 1, E)                                            # [1, E]

    # Fused context weight: rows = [w_obs; w_act; w_oth; w_ex; bias], then
    # zero rows padding Kctx up to a multiple of 128 (one-time cost at init;
    # keeps ctx_in / w_ctx (8,128)-aligned at runtime).
    w_ctx = jnp.concatenate([w_obs, w_act, w_oth, w_ex, bias], axis=0)
    k_used = w_ctx.shape[0]
    k_pad = 128 * ((k_used + 127) // 128)
    w_ctx = jnp.pad(w_ctx, ((0, k_pad - k_used), (0, 0)))

    # bf16 MXU operands (f32 accumulation in-kernel); v stays f32 (VPU path).
    return {'w_ctx': w_ctx.astype(jnp.bfloat16),
            'w_lat': w_lat.astype(jnp.bfloat16),
            'v': v}


def _pack_context(params, current_memory):
    """Builds the padded, bf16-cast kernel operands for a whole batch at once."""
    f32, bf16 = jnp.float32, jnp.bfloat16
    obs = current_memory['current_obs'].astype(f32)
    act = jax.lax.stop_gradient(current_memory['actions'].astype(f32))  # .detach()
    oth = current_memory['other_actions'].astype(f32)
    prev = current_memory['states'].astype(f32)
    cs = current_memory['current_state'].astype(f32)
    _ = current_memory['rewards']   # "not really needed atm" per the docstring

    B, A, Dobs = obs.shape
    P, E = prev.shape[1], prev.shape[2]
    Kpad = params['w_ctx'].shape[0]

    # state_agent_existence = current_state[:, :, 1]
    exist = cs[:, :, 1]                                               # [B, A]

    feats = jnp.concatenate(
        [obs.reshape(B, A * Dobs), act, oth.reshape(B, -1), exist,
         jnp.ones((B, 1), f32)], axis=-1)                             # [B, Kraw+1]
    k_used = feats.shape[-1]
    if k_used > Kpad:
        raise ValueError("context features exceed the padded weight width")
    ctx_in = jnp.pad(feats, ((0, 0), (0, Kpad - k_used))).astype(bf16)  # [B, Kpad]
    prev2d = prev.reshape(B * P, E).astype(bf16)                        # [B*P, E]
    return ctx_in, prev2d, (B, P, E, Kpad)


def belief_forward(params, current_memory, with_resample=True, eval=False,
                   row_tile=None):
    """Mirrors BeliefModel.forward -> policy_return dict.

    `row_tile` controls how many batch rows (environments / env-steps) each
    grid step processes; rows are tiled on a real "parallel" grid axis so many
    envs/steps are amortized over one pallas_call (and split across v7x's two
    TensorCores).
    """
    f32 = jnp.float32
    ctx_in, prev2d, (B, P, E, Kpad) = _pack_context(params, current_memory)

    # ---- row tiling ---------------------------------------------------------
    if row_tile is None:
        if B <= 16:
            row_tile = B
        elif B <= 256:
            row_tile = max(16, ((B // 2) // 16) * 16)   # ~2 tiles (v7x megacore)
        else:
            row_tile = 128
    if row_tile >= B:
        row_tile, n_tiles = B, 1
    else:
        row_tile = max(16, (row_tile // 16) * 16)       # bf16 sublane alignment
        n_tiles = -(-B // row_tile)
    Bp = n_tiles * row_tile
    if Bp != B:
        ctx_in = jnp.pad(ctx_in, ((0, Bp - B), (0, 0)))
        prev2d = jnp.pad(prev2d, ((0, (Bp - B) * P), (0, 0)))

    aux_lanes = 128 * pl.cdiv(P + 1, 128)
    tbp = row_tile * P

    # ---- cost hint for XLA scheduling --------------------------------------
    flops = (2 * Bp * Kpad * E        # fused context matmul
             + 2 * Bp * P * E * E     # latent matmul
             + 8 * Bp * P * E)        # add / tanh-mul / log_w reduce (approx)
    transcendentals = Bp * P * E + Bp * P + Bp            # tanh + exp + log
    bytes_accessed = (Bp * Kpad * 2 + Bp * P * E * 2      # bf16 activations
                      + Kpad * E * 2 + E * E * 2 + E * 4  # weights + v
                      + Bp * P * E * 4 + Bp * aux_lanes * 4)  # f32 outputs

    # NOTE: VMEM per grid step (double-buffered activations + resident weights)
    # is far below the 32 MiB scoped default on every generation at these row
    # tiles; raise vmem_limit_bytes only if row_tile is pushed into the 1000s.
    latent_p, aux_p = pl.pallas_call(
        _belief_kernel,
        out_shape=(jax.ShapeDtypeStruct((Bp, P, E), f32),           # latent_state
                   jax.ShapeDtypeStruct((Bp, aux_lanes), f32)),     # losses | total
        grid=(n_tiles,),
        in_specs=[
            pl.BlockSpec((row_tile, Kpad), lambda i: (i, 0)),       # ctx_in
            pl.BlockSpec((Kpad, E), lambda i: (0, 0)),              # w_ctx (resident)
            pl.BlockSpec((tbp, E), lambda i: (i, 0)),               # prev particles
            pl.BlockSpec((E, E), lambda i: (0, 0)),                 # w_lat (resident)
            pl.BlockSpec((1, E), lambda i: (0, 0)),                 # v     (resident)
        ],
        out_specs=(pl.BlockSpec((row_tile, P, E), lambda i: (i, 0, 0)),
                   pl.BlockSpec((row_tile, aux_lanes), lambda i: (i, 0))),
        compiler_params=pltpu.CompilerParams(
            dimension_semantics=("parallel",)),
        cost_estimate=pl.CostEstimate(flops=flops,
                                      transcendentals=transcendentals,
                                      bytes_accessed=bytes_accessed),
    )(ctx_in, params['w_ctx'], prev2d, params['w_lat'], params['v'])

    latent = latent_p[:B]
    losses = aux_p[:B, :P]            # log(w_t) per particle   [B, P]
    total = aux_p[:B, P:P + 1]        # logsumexp(log w_t)      [B, 1]

    # TODO(synk): particle resampling (`with_resample`), the killed-particle
    # count and the training-time custom_vjp live only in the GPLBeliefModule
    # child; reported as 0 / forward-only here.
    policy_return = {
        'latent_state': latent,
        'total_encoding_loss': total,
        'encoding_losses': losses,
        'num_killed_particles': jnp.zeros((), jnp.int32),
        'others': None,
    }
    return policy_return


def _reference(params, current_memory):
    """Pure-JAX reference using the same bf16-rounded operands as the kernel."""
    f32, bf16 = jnp.float32, jnp.bfloat16
    obs = current_memory['current_obs'].astype(f32)
    act = current_memory['actions'].astype(f32)
    oth = current_memory['other_actions'].astype(f32)
    prev = current_memory['states'].astype(f32)
    exist = current_memory['current_state'].astype(f32)[:, :, 1]
    B, A, Dobs = obs.shape
    P, E = prev.shape[1], prev.shape[2]
    Kpad = params['w_ctx'].shape[0]

    feats = jnp.concatenate(
        [obs.reshape(B, A * Dobs), act, oth.reshape(B, -1), exist,
         jnp.ones((B, 1), f32)], axis=-1)
    feats = jnp.pad(feats, ((0, 0), (0, Kpad - feats.shape[-1])))

    ctx = jnp.dot(feats.astype(bf16), params['w_ctx'],
                  preferred_element_type=f32)
    z = jnp.dot(prev.reshape(B * P, E).astype(bf16), params['w_lat'],
                preferred_element_type=f32).reshape(B, P, E)
    h = jnp.tanh(z + ctx[:, None, :])
    v = params['v'].astype(f32)
    log_w = jnp.sum(h * v[None, :, :], axis=-1)
    m = jnp.max(log_w, axis=-1, keepdims=True)
    total = m + jnp.log(jnp.sum(jnp.exp(log_w - m), axis=-1, keepdims=True))
    return h, log_w, total


if __name__ == "__main__":
    # Small shapes implied by the forward signature.
    B, A, Dobs, Act, P, E, S = 2, 4, 16, 5, 8, 32, 3

    root = jax.random.PRNGKey(0)
    kp, kd = jax.random.split(root)
    params = init_params(kp, num_agents=A, obs_dim=Dobs,
                         action_space=Act, encoding_dim=E)

    def make_memory(key, batch):
        k_obs, k_rew, k_act, k_oth, k_st, k_cs = jax.random.split(key, 6)
        one_hot_actions = jax.nn.one_hot(
            jax.random.randint(k_act, (batch,), 0, Act), Act, dtype=jnp.float32)
        other_one_hot = jax.nn.one_hot(
            jax.random.randint(k_oth, (batch, A - 1), 0, Act), Act,
            dtype=jnp.float32)
        return {
            'current_obs': jax.random.normal(k_obs, (batch, A, Dobs), jnp.float32),
            'rewards': jax.random.normal(k_rew, (batch, 1), jnp.float32),
            'actions': one_hot_actions,                 # [batch, Act]
            'other_actions': other_one_hot,             # [batch, A-1, Act]
            'states': jax.random.normal(k_st, (batch, P, E), jnp.float32),
            'current_state': jax.random.normal(k_cs, (batch, A, S), jnp.float32),
        }

    def run_and_check(memory, row_tile=None):
        out = belief_forward(params, memory, with_resample=True, eval=False,
                             row_tile=row_tile)
        latent = jax.block_until_ready(out['latent_state'])
        losses = jax.block_until_ready(out['encoding_losses'])
        total = jax.block_until_ready(out['total_encoding_loss'])
        batch = memory['current_obs'].shape[0]
        assert latent.shape == (batch, P, E)
        assert losses.shape == (batch, P)
        assert total.shape == (batch, 1)
        h_r, logw_r, total_r = _reference(params, memory)
        assert bool(jnp.allclose(latent, h_r, rtol=5e-3, atol=5e-3))
        assert bool(jnp.allclose(losses, logw_r, rtol=5e-3, atol=5e-3))
        assert bool(jnp.allclose(total, total_r, rtol=5e-3, atol=5e-3))

    k_small, k_big = jax.random.split(kd)
    # (a) Spec-sized tiny call (single-tile grid).
    run_and_check(make_memory(k_small, B))
    # (b) Batched rollout-style call: 64 envs through one pallas_call on a
    #     4-step "parallel" row grid (weights stay VMEM-resident across steps).
    run_and_check(make_memory(k_big, 64), row_tile=16)

    print("KERNEL_OK")
</pallas_src>

<mosaic_0001>
module attributes {stable_mosaic.version = 11 : i64} {
  func.func @_belief_kernel(%arg0: i32, %arg1: memref<2x128xbf16, #tpu.memory_space<vmem>>, %arg2: memref<128x32xbf16, #tpu.memory_space<vmem>>, %arg3: memref<16x32xbf16, #tpu.memory_space<vmem>>, %arg4: memref<32x32xbf16, #tpu.memory_space<vmem>>, %arg5: memref<1x32xf32, #tpu.memory_space<vmem>>, %arg6: memref<2x8x32xf32, #tpu.memory_space<vmem>>, %arg7: memref<2x128xf32, #tpu.memory_space<vmem>>) attributes {dimension_semantics = [#tpu.dimension_semantics<parallel>], iteration_bounds = array<i64: 1>, scalar_prefetch = 0 : i64, scratch_operands = 0 : i64, tpu.core_type = #tpu.core_type<tc>, window_params = [{transform_indices = @transform_0, window_bounds = array<i64: 2, 128>}, {pipeline_mode = #tpu.pipeline_mode<synchronous>, transform_indices = @transform_1, window_bounds = array<i64: 128, 32>}, {transform_indices = @transform_2, window_bounds = array<i64: 16, 32>}, {pipeline_mode = #tpu.pipeline_mode<synchronous>, transform_indices = @transform_3, window_bounds = array<i64: 32, 32>}, {pipeline_mode = #tpu.pipeline_mode<synchronous>, transform_indices = @transform_4, window_bounds = array<i64: 1, 32>}, {transform_indices = @transform_5, window_bounds = array<i64: 2, 8, 32>}, {transform_indices = @transform_6, window_bounds = array<i64: 2, 128>}]} {
    %c0 = arith.constant 0 : index
    %c0_0 = arith.constant 0 : index
    %0 = vector.load %arg1[%c0, %c0_0] : memref<2x128xbf16, #tpu.memory_space<vmem>>, vector<2x128xbf16>
    %c0_1 = arith.constant 0 : index
    %c0_2 = arith.constant 0 : index
    %1 = vector.load %arg2[%c0_1, %c0_2] : memref<128x32xbf16, #tpu.memory_space<vmem>>, vector<128x32xbf16>
    %cst = arith.constant dense<0.000000e+00> : vector<2x32xf32>
    %2 = tpu.matmul %0, %1, %cst {dimension_numbers = #tpu.dot_dimension_numbers<[1], [0], [0], [1], [0, 0, 1, 1], [], []>} : vector<2x128xbf16>, vector<128x32xbf16>, vector<2x32xf32> -> vector<2x32xf32>
    %c0_3 = arith.constant 0 : index
    %c0_4 = arith.constant 0 : index
    %3 = vector.load %arg3[%c0_3, %c0_4] : memref<16x32xbf16, #tpu.memory_space<vmem>>, vector<16x32xbf16>
    %c0_5 = arith.constant 0 : index
    %c0_6 = arith.constant 0 : index
    %4 = vector.load %arg4[%c0_5, %c0_6] : memref<32x32xbf16, #tpu.memory_space<vmem>>, vector<32x32xbf16>
    %cst_7 = arith.constant dense<0.000000e+00> : vector<16x32xf32>
    %5 = tpu.matmul %3, %4, %cst_7 {dimension_numbers = #tpu.dot_dimension_numbers<[1], [0], [0], [1], [0, 0, 1, 1], [], []>} : vector<16x32xbf16>, vector<32x32xbf16>, vector<16x32xf32> -> vector<16x32xf32>
    %6 = vector.shape_cast %5 : vector<16x32xf32> to vector<2x8x32xf32>
    %7 = vector.shape_cast %2 : vector<2x32xf32> to vector<2x1x32xf32>
    %8 = vector.broadcast %7 : vector<2x1x32xf32> to vector<2x8x32xf32>
    %9 = arith.addf %6, %8 : vector<2x8x32xf32>
    %10 = math.tanh %9 : vector<2x8x32xf32>
    %c0_8 = arith.constant 0 : index
    %c0_9 = arith.constant 0 : index
    %c0_10 = arith.constant 0 : index
    %11 = vector.load %arg6[%c0_8, %c0_9, %c0_10] : memref<2x8x32xf32, #tpu.memory_space<vmem>>, vector<2x8x32xf32>
    tpu.vector_store %arg6[%c0_8, %c0_9, %c0_10], %10 {strides = array<i32>} : memref<2x8x32xf32, #tpu.memory_space<vmem>>, vector<2x8x32xf32>,
    %c0_11 = arith.constant 0 : index
    %c0_12 = arith.constant 0 : index
    %12 = vector.load %arg5[%c0_11, %c0_12] : memref<1x32xf32, #tpu.memory_space<vmem>>, vector<1x32xf32>
    %13 = vector.shape_cast %12 : vector<1x32xf32> to vector<1x1x32xf32>
    %14 = vector.broadcast %13 : vector<1x1x32xf32> to vector<2x8x32xf32>
    %15 = arith.mulf %10, %14 : vector<2x8x32xf32>
    %cst_13 = arith.constant dense<0.000000e+00> : vector<2x8xf32>
    %16 = vector.multi_reduction <add>, %15, %cst_13 [2] : vector<2x8x32xf32> to vector<2x8xf32>
    %cst_14 = arith.constant dense<0xFF800000> : vector<2xf32>
    %17 = vector.multi_reduction <maximumf>, %16, %cst_14 [1] : vector<2x8xf32> to vector<2xf32>
    %18 = vector.shape_cast %17 : vector<2xf32> to vector<2x1xf32>
    %19 = vector.broadcast %18 : vector<2x1xf32> to vector<2x8xf32>
    %20 = arith.subf %16, %19 : vector<2x8xf32>
    %21 = math.exp %20 : vector<2x8xf32>
    %cst_15 = arith.constant dense<0.000000e+00> : vector<2xf32>
    %22 = vector.multi_reduction <add>, %21, %cst_15 [1] : vector<2x8xf32> to vector<2xf32>
    %23 = vector.shape_cast %22 : vector<2xf32> to vector<2x1xf32>
    %24 = math.log %23 : vector<2x1xf32>
    %25 = arith.addf %18, %24 : vector<2x1xf32>
    %26 = vector.shape_cast %25 : vector<2x1xf32> to vector<2x1xf32>
    %27 = vector.broadcast %26 : vector<2x1xf32> to vector<2x120xf32>
    %28 = tpu.concatenate %16, %27 in 1 : vector<2x8xf32>, vector<2x120xf32> -> vector<2x128xf32>
    %c0_16 = arith.constant 0 : index
    %c0_17 = arith.constant 0 : index
    %29 = vector.load %arg7[%c0_16, %c0_17] : memref<2x128xf32, #tpu.memory_space<vmem>>, vector<2x128xf32>
    tpu.vector_store %arg7[%c0_16, %c0_17], %28 {strides = array<i32>} : memref<2x128xf32, #tpu.memory_space<vmem>>, vector<2x128xf32>,
    return
  }
  func.func @transform_0(%arg0: i32) -> (i32, i32) {
    %c0_i32 = arith.constant 0 : i32
    %c0_i32_0 = arith.constant 0 : i32
    return %arg0, %c0_i32 : i32, i32
  }
  func.func @transform_1(%arg0: i32) -> (i32, i32) {
    %c0_i32 = arith.constant 0 : i32
    %c0_i32_0 = arith.constant 0 : i32
    %c0_i32_1 = arith.constant 0 : i32
    return %c0_i32, %c0_i32_0 : i32, i32
  }
  func.func @transform_2(%arg0: i32) -> (i32, i32) {
    %c0_i32 = arith.constant 0 : i32
    %c0_i32_0 = arith.constant 0 : i32
    return %arg0, %c0_i32 : i32, i32
  }
  func.func @transform_3(%arg0: i32) -> (i32, i32) {
    %c0_i32 = arith.constant 0 : i32
    %c0_i32_0 = arith.constant 0 : i32
    %c0_i32_1 = arith.constant 0 : i32
    return %c0_i32, %c0_i32_0 : i32, i32
  }
  func.func @transform_4(%arg0: i32) -> (i32, i32) {
    %c0_i32 = arith.constant 0 : i32
    %c0_i32_0 = arith.constant 0 : i32
    %c0_i32_1 = arith.constant 0 : i32
    return %c0_i32, %c0_i32_0 : i32, i32
  }
  func.func @transform_5(%arg0: i32) -> (i32, i32, i32) {
    %c0_i32 = arith.constant 0 : i32
    %c0_i32_0 = arith.constant 0 : i32
    %c0_i32_1 = arith.constant 0 : i32
    return %arg0, %c0_i32, %c0_i32_0 : i32, i32, i32
  }
  func.func @transform_6(%arg0: i32) -> (i32, i32) {
    %c0_i32 = arith.constant 0 : i32
    %c0_i32_0 = arith.constant 0 : i32
    return %arg0, %c0_i32 : i32, i32
  }
}

</mosaic_0001>

<bundles_post_ra>
// kernel: tpu_custom_call.1
= control target key start
LH: loop header
LB: loop body
LE: loop exit
PB: predicated region body
PF: predicated region fallthrough
CT: control target
= control target key end

     0   :  { %12 = vsyncpa [#allocation3], 0  ;;  %v477_v1 = vmov 0.0   ;;  %vm478_vm0 = vmmov 0   ;;  %s592_s0 = inlined_call_operand.vmem [shape: bf16[2,128], index: 0, kind: input, shape index: {}]   ;;  %s593_s1 = inlined_call_operand.vmem [shape: bf16[128,32], index: 1, kind: input, shape index: {}]   ;;  %s594_s2 = inlined_call_operand.vmem [shape: bf16[16,32], index: 2, kind: input, shape index: {}]   ;;  %s595_s3 = inlined_call_operand.vmem [shape: bf16[32,32], index: 3, kind: input, shape index: {}]   ;;  %s596_s4 = inlined_call_operand.vmem [shape: f32[1,32], index: 4, kind: input, shape index: {}]   ;;  %s597_s5 = inlined_call_operand.hbm [shape: f32[2,8,32], index: 5, kind: output, shape index: {0}]   ;;  %s598_s6 = inlined_call_operand.hbm [shape: f32[2,128], index: 6, kind: output, shape index: {1}]  }
   0x1   :  { %v408_v0 = vld [vmem:[%s593_s1] sm:$0xff]   ;;  %370 = vmatprep.subr.bf16.mxu0 %v477_v1  ;;  %390 = vmatprep.subr.bf16.mxu1 %v477_v1  ;;  %v409_v2 = vld [vmem:[%s593_s1 + $0x8] sm:$0xff]   ;;  %v410_v3 = vld [vmem:[%s593_s1 + $0x10] sm:$0xff]  }
   0x2   :  { %371 = vmatpush3.bf16.msra.mxu0 %v408_v0  ;;  %386 = vmatprep.mubr.msk.bf16.mxu0 %vm478_vm0, %v477_v1  ;;  %v415_v4 = vld [vmem:[%s595_s3] sm:$0xff]   ;;  %v411_v5 = vld [vmem:[%s593_s1 + $0x18] sm:$0xff]   ;;  %v417_v6 = vld [vmem:[%s595_s3 + $0x8] sm:$0xff]  }
   0x3   :  { %372 = vmatprep.subr.bf16.mxu0 %v477_v1  ;;  %394 = vmatprep.mubr.msk.bf16.mxu1 %vm478_vm0, %v477_v1 }
   0x4   :  { %391 = vmatpush3.bf16.msra.mxu1 %v415_v4 }
   0x5   :  { %392 = vmatprep.subr.bf16.mxu1 %v477_v1 }
   0x6   :  { %373 = vmatpush3.bf16.msra.mxu0 %v409_v2 }
   0x7   :  { %374 = vmatprep.subr.bf16.mxu0 %v477_v1 }
   0xa   :  { %375 = vmatpush3.bf16.msra.mxu0 %v410_v3 }
   0xb   :  { %376 = vmatprep.subr.bf16.mxu0 %v477_v1 }
   0xc   :  { %13 = vsyncpa [#allocation5], 0  ;;  %v418_v7 = vld [vmem:[%s594_s2] sm:$0xff]   ;;  %393 = vmatpush3.bf16.msra.mxu1 %v417_v6  ;;  %vm153_vm1 = vcmask 261120   ;;  %v413_v9 = vld [vmem:[%s593_s1 + $0x28] sm:$0xff]   ;;  %v202_v19 = vlaneseq  ;;  %vm264_vm2 = vcmask 1041409  }
   0xd   :  { %v412_v8 = vld [vmem:[%s593_s1 + $0x20] sm:$0xff]   ;;  %v414_v10 = vld [vmem:[%s593_s1 + $0x30] sm:$0xff]   ;;  %v416_v11 = vld [vmem:[%s593_s1 + $0x38] sm:$0xff]   ;;  %v479_v17 = vmov 1966171168   ;;  %vm267_vm3 = vcmask 58368  }
   0xe   :  { %377 = vmatpush3.bf16.msra.mxu0 %v411_v5  ;;  %v25_v12 = vld [vmem:[%s592_s0] sm:$0x1]  ;;  %v200_v18 = vunpack.c.l.s4 %v479_v17  ;;  %v203_v21 = vshrl.u32 %v202_v19, 7  ;;  %v255_v43 = vand.u32 127, %v202_v19  ;;  %v480_v51 = vmov 0  }
   0xf   :  { %378 = vmatprep.subr.bf16.mxu0 %v477_v1  ;;  %395 = vmatmul.mubr.msk.bf16.vlgmr.msra.gmra.mrb[0].mxu1 %vm153_vm1, %v418_v7  ;;  %v357_v36 = vld [vmem:[%s596_s4] ss:$0 sm:$0xff]  ;;  %s481_s4 = smov [#allocation2]  }
  0x10   :  { %v201_v20 = vunpack.c.0.s8 %v200_v18  ;;  %v223_v26 = vsub.s32 0, %v203_v21  ;;  %v258_v45 = vsub.s32 %v255_v43, %v203_v21  ;;  %407 = vset.pattern.permute.xlu0 %v480_v51  ;;  %406 = vset.pattern.permute.xlu1 %v480_v51  ;;  %v278_v52 = vsub.s32 1, %v203_v21  ;;  %s320_s19 = sshll.u32 %s481_s4, 4  ;;  %s321_s19 = int_to_ptr.vmem [resolvable:$true] %s320_s19 }
  0x11   :  { %s429_s20 = scalar_lea.vmem %s321_s19, 256  ;;  %p434_p1 = scmp.lt.s32.totalorder %s321_s19, %s321_s19 }
  0x12   :  { %379 = vmatpush3.bf16.msra.mxu0 %v412_v8  ;;  %v204_v22 = vsub.s32 %v201_v20, %v203_v21  ;;  %p430_p0 = scmp.ne.s32.totalorder %s321_s19, %s429_s20  ;;  %p435_p2 = scmp.lt.s32.totalorder %s429_s20, %s429_s20 }
  0x13   :  { %380 = vmatprep.subr.bf16.mxu0 %v477_v1 }
  0x14   :  { %p436_p3 = por %p435_p2, %p434_p1 }
  0x16   :  { %381 = vmatpush3.bf16.msra.mxu0 %v413_v9  ;;  %p437_p4 = pnand %p436_p3, %p430_p0 }
  0x17   :  { %382 = vmatprep.subr.bf16.mxu0 %v477_v1 }
  0x1a   :  { %383 = vmatpush3.bf16.msra.mxu0 %v414_v10 }
  0x1b   :  { %384 = vmatprep.subr.bf16.mxu0 %v477_v1 }
  0x1e   :  { %385 = vmatpush3.bf16.msra.mxu0 %v416_v11 }
  0x21   :  { %387 = vmatmul.mubr.bf16.vlgmr.msra.gmra.mrb[0].mxu0 %v25_v12 }
  0xe2   :  { %v191_v13 = vpop.f32.mrb[0].mxu1 }
  0xe3   :  { %v396_v14 = vpop.f32.mrb[1].mxu1 }
  0xe4   :  { %v194_v15 = vpop.f32.mrb[2].mxu1 }
  0xe5   :  { %v397_v16 = vpop.f32.mrb[3].mxu1 }
  0xf4   :  { %v124_v23 = vpop.f32.mrb[0].mxu0 }
  0xf5   :  { %v205_v24 = vrot.slane %v124_v23, %v204_v22  ;;  %v388_v25 = vpop.f32.mrb[1].mxu0 }
  0xf6   :  { %v127_v27 = vpop.f32.mrb[2].mxu0 }
  0xf7   :  { %v206_v28 = vcombine.high %v205_v24, %v205_v24  ;;  %v213_v29 = vrot.slane %v205_v24, %v204_v22  ;;  %v389_v30 = vpop.f32.mrb[3].mxu0 }
  0xf9   :  { %v224_v31 = vrot.slane %v213_v29, %v223_v26  ;;  %v220_v32 = vrot.slane %v206_v28, %v204_v22 }
  0xfb   :  { %v231_v33 = vadd.f32 %v224_v31, %v191_v13  ;;  %v228_v34 = vrot.slane %v220_v32, %v223_v26 }
  0xfd   :  { %419 = vtanh.f32 %v231_v33  ;;  %v232_v35 = vadd.f32 %v228_v34, %v194_v15 }
  0xff   :  { %421 = vtanh.f32 %v232_v35 }
 0x107   :  { %v420_v37 = vpop.eup %419 }
 0x108   :  { %235 = vst.msk [vmem:[#allocation2] sm:$0xff] %vm153_vm1, %v420_v37  ;;  %v244_v38 = vmul.f32 %v420_v37, %v357_v36 }
 0x109   :  { %v422_v39 = vpop.eup %421 }
 0x10a   :  { %236 = vst.msk [vmem:[#allocation2 + $0x8] sm:$0xff] %vm153_vm1, %v422_v39  ;;  %v246_v40 = vsel %vm153_vm1, %v244_v38, 0.0  ;;  %v245_v41 = vmul.f32 %v422_v39, %v357_v36 }
 0x10b   :  { %247 = vadd.xlane.f32.xlu0 %v246_v40 }
 0x10c   :  { %v249_v42 = vsel %vm153_vm1, %v245_v41, 0.0 }
 0x10f   :  { %250 = vadd.xlane.f32.xlu0 %v249_v42 }
 0x198   :  { %v248_v44 = vpop.xlane.xlu0 %247 }
 0x199   :  { %v259_v47 = vrot.slane %v248_v44, %v258_v45 }
 0x19c   :  { %v251_v46 = vpop.xlane.xlu0 %250 }
 0x19d   :  { %v263_v48 = vrot.slane %v251_v46, %v258_v45 }
 0x19f   :  { %v265_v49 = vsel %vm264_vm2, %v263_v48, %v259_v47 }
 0x1a0   :  { %v268_v50 = vsel %vm267_vm3, %v265_v49, -inf }
 0x1a1   :  { %269 = vmax.xlane.f32.xlu1 %v268_v50 }
 0x22e   :  { %v270_v53 = vpop.xlane.xlu1 %269 }
 0x22f   :  { %v275_v54 = vrot.slane %v270_v53, %v223_v26  ;;  %v279_v55 = vrot.slane %v270_v53, %v278_v52 }
 0x231   :  { %v282_v56 = vsub.f32 %v248_v44, %v275_v54  ;;  %v283_v57 = vsub.f32 %v251_v46, %v279_v55 }
 0x233   :  { %v284_v58 = vmul.f32 1.442695, %v282_v56  ;;  %v286_v59 = vmul.f32 1.442695, %v283_v57 }
 0x235   :  { %423 = vpow2.f32 %v284_v58 }
 0x236   :  { %425 = vpow2.f32 %v286_v59 }
 0x23f   :  { %v424_v60 = vpop.eup %423 }
 0x240   :  { %v426_v61 = vpop.eup %425  ;;  %291 = vperm.xlu1 %406, %v424_v60  }
 0x241   :  { %294 = vperm.xlu0 %407, %v426_v61  }
 0x2bf   :  { %v292_v62 = vpop.permute.xlu1 %291 }
 0x2c0   :  { %v295_v63 = vpop.permute.xlu0 %294  ;;  %v299_v0 = vrot.slane %v292_v62, %v258_v45 }
 0x2c1   :  { %v303_v1 = vrot.slane %v295_v63, %v258_v45 }
 0x2c3   :  { %v304_v2 = vsel %vm264_vm2, %v303_v1, %v299_v0 }
 0x2c4   :  { %v306_v3 = vsel %vm267_vm3, %v304_v2, 0.0 }
 0x2c5   :  { %307 = vadd.xlane.f32.xlu1 %v306_v3 }
 0x2c6   :  { %440 = shalt.err (!%p437_p4)
}
 0x2c7   :  { %s441_s23 = scalar_lea.hbm %s597_s5, 256 }
 0x2c8   :  { %p442_p5 = scmp.ne.s32.totalorder %s597_s5, %s441_s23  ;;  %p445_p6 = scmp.lt.u32.totalorder %s441_s23, %s597_s5 }
 0x2ca   :  { %p447_p7 = pnand %p445_p6, %p442_p5 }
 0x2cc   :  { %450 = shalt.err (!%p447_p7)
}
 0x2cd   :  { %s482_s28 = smov 128   ;;  %s483_s29 = smov 8   ;;  %vm312_vm4 = vcmask 64512  }
 0x2ce   :  { %326 = dma.vmem_to_hbm [thread:$0]  %s321_s19, 256, %s597_s5, [#allocation3], %s482_s28, %s482_s28, %s483_s29  }
 0x2cf   :  { %s484_s8 = smov [#allocation4]  }
 0x2d0   :  { %s333_s9 = sshll.u32 %s484_s8, 4  ;;  %s334_s9 = int_to_ptr.vmem [resolvable:$true] %s333_s9 }
 0x2d1   :  { %s451_s10 = scalar_lea.vmem %s334_s9, 32  ;;  %p456_p9 = scmp.lt.s32.totalorder %s334_s9, %s334_s9 }
 0x2d2   :  { %p452_p8 = scmp.ne.s32.totalorder %s334_s9, %s451_s10  ;;  %p457_p10 = scmp.lt.s32.totalorder %s451_s10, %s451_s10 }
 0x2d4   :  { %p458_p11 = por %p457_p10, %p456_p9 }
 0x2d6   :  { %p459_p12 = pnand %p458_p11, %p452_p8 }
 0x352   :  { %v308_v4 = vpop.xlane.xlu1 %307 }
 0x353   :  { %427 = vlog2.f32 %v308_v4 }
 0x35d   :  { %v428_v5 = vpop.eup %427 }
 0x35e   :  { %v310_v6 = vmul.f32 0.6931472, %v428_v5 }
 0x360   :  { %v311_v7 = vadd.f32 %v310_v6, %v270_v53 }
 0x362   :  { %v313_v8 = vsel %vm312_vm4, %v265_v49, %v311_v7 }
 0x363   :  { %314 = vst [vmem:[#allocation4] sm:$0x3] %v313_v8 }
 0x364   :  { %462 = shalt.err (!%p459_p12)
}
 0x365   :  { %s463_s12 = scalar_lea.hbm %s598_s6, 32 }
 0x366   :  { %p464_p13 = scmp.ne.s32.totalorder %s598_s6, %s463_s12  ;;  %p467_p0 = scmp.lt.u32.totalorder %s463_s12, %s598_s6 }
 0x368   :  { %p469_p1 = pnand %p467_p0, %p464_p13 }
 0x36a   :  { %472 = shalt.err (!%p469_p1)
}
 0x36b   :  { %336 = dma.vmem_to_hbm [thread:$0]  %s334_s9, 32, %s598_s6, [#allocation5]  }
 0x36c   :  { %473 = dma.done.wait [#allocation3], 256  }
 0x36d   :  { %474 = vsyncadd [#allocation3], 4294967040 }
 0x36e   :  { %475 = dma.done.wait [#allocation5], 32  }
 0x36f   :  { %476 = vsyncadd [#allocation5], 4294967264 }
 0x370   :  { %343 = vsyncpa [#allocation3], 1 }
 0x371   :  { %344 = vsyncpa [#allocation5], 1 }

</bundles_post_ra>
